<compile_context>
chip_gen: v5e
topology: v5e:2x2
jax: 0.10.0
libtpu: 0.0.40
codegen_flags: <defaults>
</compile_context>

<pallas_src>
import functools

import jax
import jax.numpy as jnp
from jax import lax
from jax.experimental import pallas as pl
from jax.experimental.pallas import tpu as pltpu


def _embedding_kernel(offsets_ref,          # SMEM  (Ncat,) int32       (scalar prefetch)
                      x_ref,                # VMEM  (TB, Ncon+Ncat) f32 (streamed; ids bitcast)
                      w_bd_ref,             # VMEM  (Ncon, Ncon*D)  f32 (resident, block-diag)
                      table_ref,            # VMEM  (rows, D)       f32 (resident)
                      bias_ref,             # VMEM  (1, n_tok*D)    f32 (resident: [b_con | 0 | cls])
                      out_ref,              # VMEM  (TB, n_tok*D)       (lane-dense)
                      *, num_con, num_cat, num_cat_rows, dim_embed):
    """One batch tile: build the full lane-dense row [con | cat | CLS]*D in-register."""
    tb = x_ref.shape[0]
    D = dim_embed

    x_f32 = x_ref[...]                                    # float32 view (continuous lanes)
    x_i32 = pltpu.bitcast(x_f32, jnp.int32)               # int32 view (categorical id lanes)

    pieces = []

    # ---- continuous: one MXU matmul against the block-diagonal weight --------
    if num_con:
        x_con = x_f32[:, :num_con]                        # (TB, Ncon)
        pieces.append(jnp.dot(x_con, w_bd_ref[...],
                              preferred_element_type=jnp.float32,
                              precision=lax.Precision.HIGHEST))        # (TB, Ncon*D)

    # ---- categorical: one-hot gather on the MXU -------------------------------
    # TODO(synk): for vocabularies too large to keep resident in VMEM, switch the
    # table to pl.ANY (HBM) and DMA-gather only the rows needed per tile.
    if num_cat:
        ids = x_i32[:, num_con:num_con + num_cat]         # (TB, Ncat) int32
        table = table_ref[...]                            # (rows, D)
        row_iota = lax.broadcasted_iota(jnp.int32, (tb, num_cat_rows), 1)
        for j in range(num_cat):                          # static unroll (Ncat small)
            row_id = ids[:, j:j + 1] + offsets_ref[j]     # fold per-column offset
            onehot = (row_iota == row_id).astype(jnp.float32)   # OOB id -> all-zero row
            pieces.append(jnp.dot(onehot, table,
                                  preferred_element_type=jnp.float32,
                                  precision=lax.Precision.HIGHEST))   # (TB, D)

    # ---- [CLS] slot: zeros here, the CLS vector rides in the bias row ---------
    pieces.append(jnp.zeros((tb, D), jnp.float32))

    # ---- single wide lane-dense store ------------------------------------------
    slab = jnp.concatenate(pieces, axis=-1) + bias_ref[...]             # (TB, n_tok*D)
    out_ref[...] = slab.astype(out_ref.dtype)


def _round_up(x, m):
    return ((x + m - 1) // m) * m


def _cdiv(a, b):
    return (a + b - 1) // b


def base_embedding_forward(x_con, x_cat, params, out_dtype=jnp.float32):
    """Runs BaseEmbedding.forward on {'continuous': x_con, 'categorical': x_cat}."""
    # TODO(synk): the None / empty-list branching of _continuous_embedding /
    # _categorical_embedding is pure Python control flow; only the both-present
    # path is implemented here.
    w_con, b_con, table, offsets, cls_tok = (
        params["w_con"], params["b_con"], params["table"],
        params["offsets"], params["cls"])

    B, num_con = x_con.shape
    _, num_cat = x_cat.shape
    num_cat_rows, D = table.shape
    assert num_con > 0 and num_cat > 0, "both feature groups required by this kernel"
    n_tok = num_con + num_cat + 1
    row_w = n_tok * D

    # ---- one-time wrapper-side constant prep -----------------------------------
    # Block-diagonal continuous weight: W_bd[i, j*D + d] = w_con[i, d] iff i == j.
    eye = jnp.eye(num_con, dtype=jnp.float32)
    w_bd = (eye[:, :, None] * w_con.astype(jnp.float32)[None, :, :]).reshape(
        num_con, num_con * D)
    # Bias row folds the per-column continuous bias AND the CLS token.
    bias_row = jnp.concatenate(
        [b_con.astype(jnp.float32).reshape(1, num_con * D),
         jnp.zeros((1, num_cat * D), jnp.float32),
         cls_tok.astype(jnp.float32).reshape(1, D)], axis=-1)        # (1, n_tok*D)
    offsets = offsets.astype(jnp.int32)
    table = table.astype(jnp.float32)

    # Pack the two streamed inputs into one DMA: [x_con | bitcast(int32 ids)].
    x_cat_bits = lax.bitcast_convert_type(x_cat.astype(jnp.int32), jnp.float32)
    x_packed = jnp.concatenate([x_con.astype(jnp.float32), x_cat_bits], axis=-1)

    # ---- per-generation VMEM budget & batch tile --------------------------------
    try:
        vmem_cap = int(getattr(pltpu.get_tpu_info(), "vmem_capacity_bytes", 64 << 20))
    except Exception:
        vmem_cap = 64 << 20                          # conservative (v7x per-core)
    usable = int(0.75 * vmem_cap)                    # headroom: ~48 MiB v7x, ~96 MiB v5e/v6e

    out_bytes = jnp.dtype(out_dtype).itemsize
    resident_bytes = 4 * (w_bd.size + table.size + bias_row.size)
    row_stream = 2 * (4 * (num_con + num_cat) + out_bytes * row_w)   # dbl-buffered in/out
    row_work = 4 * (num_cat_rows + 3 * row_w)                        # onehot + slab temps
    avail = max(usable - 2 * resident_bytes - (2 << 20), row_stream + row_work)
    tb_budget = max(8, min(4096, avail // (row_stream + row_work)))
    tb_budget = (tb_budget // 8) * 8

    if B <= tb_budget:
        # Keep >= 2 (even) grid steps when the batch is big enough so v7x's two
        # TensorCores both get work under dimension_semantics=("parallel",).
        tb = _round_up(_cdiv(B, 2), 8) if B >= 16 else 8
    else:
        g = _cdiv(B, tb_budget)
        if g % 2:
            g += 1
        tb = _round_up(_cdiv(B, g), 8)
    grid = _cdiv(B, tb)
    B_pad = grid * tb
    if B_pad != B:
        x_packed = jnp.pad(x_packed, ((0, B_pad - B), (0, 0)))

    vmem_need = 2 * resident_bytes + tb * (row_stream + row_work) + (2 << 20)
    vmem_limit = int(min(usable, max(vmem_need, 16 << 20)))

    kernel = functools.partial(
        _embedding_kernel,
        num_con=num_con, num_cat=num_cat,
        num_cat_rows=num_cat_rows, dim_embed=D)

    def _call(single_buffer_params):
        if single_buffer_params:
            def res_spec(shape):
                return pl.BlockSpec(shape, lambda i, offs: (0, 0),
                                    pipeline_mode=pl.Buffered(1))
        else:
            def res_spec(shape):
                return pl.BlockSpec(shape, lambda i, offs: (0, 0))
        return pl.pallas_call(
            kernel,
            out_shape=jax.ShapeDtypeStruct((B_pad, row_w), out_dtype),
            grid_spec=pltpu.PrefetchScalarGridSpec(
                num_scalar_prefetch=1,                       # offsets -> SMEM
                grid=(grid,),
                in_specs=[
                    pl.BlockSpec((tb, num_con + num_cat), lambda i, offs: (i, 0)),
                    res_spec((num_con, num_con * D)),        # block-diag W (resident)
                    res_spec((num_cat_rows, D)),             # embedding table (resident)
                    res_spec((1, row_w)),                    # bias row + CLS (resident)
                ],
                out_specs=pl.BlockSpec((tb, row_w), lambda i, offs: (i, 0)),
            ),
            compiler_params=pltpu.CompilerParams(
                dimension_semantics=("parallel",),           # v7x: tiles across both TCs
                vmem_limit_bytes=vmem_limit),
        )(offsets, x_packed, w_bd, table, bias_row)

    try:
        out_flat = _call(True)           # resident params single-buffered
    except Exception:
        # Pallas version without pipeline_mode=pl.Buffered(1): default double-buffering.
        out_flat = _call(False)

    out = out_flat.reshape(B_pad, n_tok, D)[:B]
    return {"in_backbone": out, "skip_backbone": None}


def _reference(x_con, x_cat, params):
    w_con, b_con, table, offsets, cls_tok = (
        params["w_con"], params["b_con"], params["table"],
        params["offsets"], params["cls"])
    con = x_con[:, :, None] * w_con[None] + b_con[None]
    cat = table[(x_cat + offsets[None, :])]
    cls = jnp.broadcast_to(cls_tok[None], (x_con.shape[0], 1, table.shape[-1]))
    return jnp.concatenate([con, cat, cls], axis=1)


if __name__ == "__main__":
    # Module config (small synthetic shapes)
    B = 8
    num_continuous_features = 3
    num_categorical_features = 2
    cats_per_column = (5, 5)          # num_categories = 10
    num_categories = sum(cats_per_column)
    dim_embed = 32
    # is_in_backbone_continuous = True, is_in_backbone_categorical = True,
    # use_cls = True  -> everything goes to 'in_backbone', skip_backbone is None.

    key = jax.random.PRNGKey(0)
    k0, k1, k2, k3, k4, k5 = jax.random.split(key, 6)

    d_inv = 1.0 / jnp.sqrt(dim_embed)
    num_cat_rows = ((num_categories + 7) // 8) * 8   # pad table rows for TPU tiling
    table = jnp.zeros((num_cat_rows, dim_embed), jnp.float32).at[:num_categories].set(
        jax.random.uniform(k0, (num_categories, dim_embed), jnp.float32, -d_inv, d_inv))
    params = {
        "w_con": jax.random.uniform(k1, (num_continuous_features, dim_embed),
                                    jnp.float32, -d_inv, d_inv),
        "b_con": jax.random.uniform(k2, (num_continuous_features, dim_embed),
                                    jnp.float32, -d_inv, d_inv),
        "table": table,
        "offsets": jnp.array([0, cats_per_column[0]], jnp.int32),
        "cls": jax.random.uniform(k3, (1, dim_embed), jnp.float32, -d_inv, d_inv),
    }

    x_con = jax.random.normal(k4, (B, num_continuous_features), jnp.float32)
    x_cat = jax.random.randint(k5, (B, num_categorical_features), 0, cats_per_column[0],
                               dtype=jnp.int32)

    out = base_embedding_forward(x_con, x_cat, params)
    jax.block_until_ready(out["in_backbone"])

    ref = _reference(x_con, x_cat, params)
    assert out["in_backbone"].shape == (
        B, num_continuous_features + num_categorical_features + 1, dim_embed)
    assert out["skip_backbone"] is None
    # atol 1e-4: MXU f32 matmul (precision=HIGHEST) is within a few ulps of the
    # elementwise f32 reference; 1e-4 still catches any wrong gather / lane slot.
    assert jnp.allclose(out["in_backbone"], ref, atol=1e-4), "mismatch vs reference"

    print("KERNEL_OK")
</pallas_src>

<mosaic_0001>
module attributes {stable_mosaic.version = 11 : i64} {
  func.func @_embedding_kernel(%arg0: i32, %arg1: memref<2xi32, #tpu.memory_space<smem>>, %arg2: memref<8x5xf32, #tpu.memory_space<vmem>>, %arg3: memref<3x96xf32, #tpu.memory_space<vmem>>, %arg4: memref<16x32xf32, #tpu.memory_space<vmem>>, %arg5: memref<1x192xf32, #tpu.memory_space<vmem>>, %arg6: memref<8x192xf32, #tpu.memory_space<vmem>>) attributes {dimension_semantics = [#tpu.dimension_semantics<parallel>], iteration_bounds = array<i64: 1>, scalar_prefetch = 1 : i64, scratch_operands = 0 : i64, tpu.core_type = #tpu.core_type<tc>, window_params = [{transform_indices = @transform_0, window_bounds = array<i64: 8, 5>}, {pipeline_mode = #tpu.pipeline_mode<synchronous>, transform_indices = @transform_1, window_bounds = array<i64: 3, 96>}, {pipeline_mode = #tpu.pipeline_mode<synchronous>, transform_indices = @transform_2, window_bounds = array<i64: 16, 32>}, {pipeline_mode = #tpu.pipeline_mode<synchronous>, transform_indices = @transform_3, window_bounds = array<i64: 1, 192>}, {transform_indices = @transform_4, window_bounds = array<i64: 8, 192>}]} {
    %c0 = arith.constant 0 : index
    %c0_0 = arith.constant 0 : index
    %0 = vector.load %arg2[%c0, %c0_0] : memref<8x5xf32, #tpu.memory_space<vmem>>, vector<8x5xf32>
    %1 = tpu.bitcast %0 : vector<8x5xf32> -> vector<8x5xi32>
    %2 = vector.extract_strided_slice %0 {offsets = [0, 0], sizes = [8, 3], strides = [1, 1]} : vector<8x5xf32> to vector<8x3xf32>
    %c0_1 = arith.constant 0 : index
    %c0_2 = arith.constant 0 : index
    %3 = vector.load %arg3[%c0_1, %c0_2] : memref<3x96xf32, #tpu.memory_space<vmem>>, vector<3x96xf32>
    %cst = arith.constant dense<0.000000e+00> : vector<8x96xf32>
    %4 = tpu.matmul %2, %3, %cst {dimension_numbers = #tpu.dot_dimension_numbers<[1], [0], [0], [1], [0, 0, 1, 1], [], []>, precision = #tpu.contract_precision<fp32>} : vector<8x3xf32>, vector<3x96xf32>, vector<8x96xf32> -> vector<8x96xf32>
    %5 = vector.extract_strided_slice %1 {offsets = [0, 3], sizes = [8, 2], strides = [1, 1]} : vector<8x5xi32> to vector<8x2xi32>
    %c0_3 = arith.constant 0 : index
    %c0_4 = arith.constant 0 : index
    %6 = vector.load %arg4[%c0_3, %c0_4] : memref<16x32xf32, #tpu.memory_space<vmem>>, vector<16x32xf32>
    %7 = tpu.iota {dimensions = array<i32: 1>} : vector<8x16xi32>
    %8 = vector.extract_strided_slice %5 {offsets = [0, 0], sizes = [8, 1], strides = [1, 1]} : vector<8x2xi32> to vector<8x1xi32>
    %c0_5 = arith.constant 0 : index
    %9 = memref.load %arg1[%c0_5] : memref<2xi32, #tpu.memory_space<smem>>
    %10 = vector.broadcast %9 : i32 to vector<8x1xi32>
    %11 = arith.addi %8, %10 : vector<8x1xi32>
    %12 = vector.broadcast %11 : vector<8x1xi32> to vector<8x16xi32>
    %13 = arith.cmpi eq, %7, %12 : vector<8x16xi32>
    %14 = arith.extui %13 : vector<8x16xi1> to vector<8x16xi32>
    %15 = arith.sitofp %14 : vector<8x16xi32> to vector<8x16xf32>
    %cst_6 = arith.constant dense<0.000000e+00> : vector<8x32xf32>
    %16 = tpu.matmul %15, %6, %cst_6 {dimension_numbers = #tpu.dot_dimension_numbers<[1], [0], [0], [1], [0, 0, 1, 1], [], []>, precision = #tpu.contract_precision<fp32>} : vector<8x16xf32>, vector<16x32xf32>, vector<8x32xf32> -> vector<8x32xf32>
    %17 = vector.extract_strided_slice %5 {offsets = [0, 1], sizes = [8, 1], strides = [1, 1]} : vector<8x2xi32> to vector<8x1xi32>
    %c1 = arith.constant 1 : index
    %18 = memref.load %arg1[%c1] : memref<2xi32, #tpu.memory_space<smem>>
    %19 = vector.broadcast %18 : i32 to vector<8x1xi32>
    %20 = arith.addi %17, %19 : vector<8x1xi32>
    %21 = vector.broadcast %20 : vector<8x1xi32> to vector<8x16xi32>
    %22 = arith.cmpi eq, %7, %21 : vector<8x16xi32>
    %23 = arith.extui %22 : vector<8x16xi1> to vector<8x16xi32>
    %24 = arith.sitofp %23 : vector<8x16xi32> to vector<8x16xf32>
    %cst_7 = arith.constant dense<0.000000e+00> : vector<8x32xf32>
    %25 = tpu.matmul %24, %6, %cst_7 {dimension_numbers = #tpu.dot_dimension_numbers<[1], [0], [0], [1], [0, 0, 1, 1], [], []>, precision = #tpu.contract_precision<fp32>} : vector<8x16xf32>, vector<16x32xf32>, vector<8x32xf32> -> vector<8x32xf32>
    %cst_8 = arith.constant 0.000000e+00 : f32
    %26 = vector.broadcast %cst_8 : f32 to vector<8x32xf32>
    %27 = tpu.concatenate %4, %16, %25, %26 in 1 : vector<8x96xf32>, vector<8x32xf32>, vector<8x32xf32>, vector<8x32xf32> -> vector<8x192xf32>
    %c0_9 = arith.constant 0 : index
    %c0_10 = arith.constant 0 : index
    %28 = vector.load %arg5[%c0_9, %c0_10] : memref<1x192xf32, #tpu.memory_space<vmem>>, vector<1x192xf32>
    %29 = vector.broadcast %28 : vector<1x192xf32> to vector<8x192xf32>
    %30 = arith.addf %27, %29 : vector<8x192xf32>
    %c0_11 = arith.constant 0 : index
    %c0_12 = arith.constant 0 : index
    %31 = vector.load %arg6[%c0_11, %c0_12] : memref<8x192xf32, #tpu.memory_space<vmem>>, vector<8x192xf32>
    tpu.vector_store %arg6[%c0_11, %c0_12], %30 {strides = array<i32>} : memref<8x192xf32, #tpu.memory_space<vmem>>, vector<8x192xf32>,
    return
  }
  func.func @transform_0(%arg0: i32, %arg1: memref<2xi32, #tpu.memory_space<smem>>) -> (i32, i32) {
    %c0_i32 = arith.constant 0 : i32
    %c0_i32_0 = arith.constant 0 : i32
    return %arg0, %c0_i32 : i32, i32
  }
  func.func @transform_1(%arg0: i32, %arg1: memref<2xi32, #tpu.memory_space<smem>>) -> (i32, i32) {
    %c0_i32 = arith.constant 0 : i32
    %c0_i32_0 = arith.constant 0 : i32
    %c0_i32_1 = arith.constant 0 : i32
    return %c0_i32, %c0_i32_0 : i32, i32
  }
  func.func @transform_2(%arg0: i32, %arg1: memref<2xi32, #tpu.memory_space<smem>>) -> (i32, i32) {
    %c0_i32 = arith.constant 0 : i32
    %c0_i32_0 = arith.constant 0 : i32
    %c0_i32_1 = arith.constant 0 : i32
    return %c0_i32, %c0_i32_0 : i32, i32
  }
  func.func @transform_3(%arg0: i32, %arg1: memref<2xi32, #tpu.memory_space<smem>>) -> (i32, i32) {
    %c0_i32 = arith.constant 0 : i32
    %c0_i32_0 = arith.constant 0 : i32
    %c0_i32_1 = arith.constant 0 : i32
    return %c0_i32, %c0_i32_0 : i32, i32
  }
  func.func @transform_4(%arg0: i32, %arg1: memref<2xi32, #tpu.memory_space<smem>>) -> (i32, i32) {
    %c0_i32 = arith.constant 0 : i32
    %c0_i32_0 = arith.constant 0 : i32
    return %arg0, %c0_i32 : i32, i32
  }
}

module attributes {stable_mosaic.version = 11 : i64} {
  func.func @_embedding_kernel(%arg0: i32, %arg1: memref<2xi32, #tpu.memory_space<smem>>, %arg2: memref<8x5xf32, #tpu.memory_space<vmem>>, %arg3: memref<3x96xf32, #tpu.memory_space<vmem>>, %arg4: memref<16x32xf32, #tpu.memory_space<vmem>>, %arg5: memref<1x192xf32, #tpu.memory_space<vmem>>, %arg6: memref<8x192xf32, #tpu.memory_space<vmem>>) attributes {dimension_semantics = [#tpu.dimension_semantics<parallel>], iteration_bounds = array<i64: 1>, scalar_prefetch = 1 : i64, scratch_operands = 0 : i64, tpu.core_type = #tpu.core_type<tc>, window_params = [{transform_indices = @transform_0, window_bounds = array<i64: 8, 5>}, {pipeline_mode = #tpu.pipeline_mode<synchronous>, transform_indices = @transform_1, window_bounds = array<i64: 3, 96>}, {pipeline_mode = #tpu.pipeline_mode<synchronous>, transform_indices = @transform_2, window_bounds = array<i64: 16, 32>}, {pipeline_mode = #tpu.pipeline_mode<synchronous>, transform_indices = @transform_3, window_bounds = array<i64: 1, 192>}, {transform_indices = @transform_4, window_bounds = array<i64: 8, 192>}]} {
    %c0 = arith.constant 0 : index
    %c0_0 = arith.constant 0 : index
    %0 = vector.load %arg2[%c0, %c0_0] : memref<8x5xf32, #tpu.memory_space<vmem>>, vector<8x5xf32>
    %1 = tpu.bitcast %0 : vector<8x5xf32> -> vector<8x5xi32>
    %2 = vector.extract_strided_slice %0 {offsets = [0, 0], sizes = [8, 3], strides = [1, 1]} : vector<8x5xf32> to vector<8x3xf32>
    %c0_1 = arith.constant 0 : index
    %c0_2 = arith.constant 0 : index
    %3 = vector.load %arg3[%c0_1, %c0_2] : memref<3x96xf32, #tpu.memory_space<vmem>>, vector<3x96xf32>
    %cst = arith.constant dense<0.000000e+00> : vector<8x96xf32>
    %4 = tpu.matmul %2, %3, %cst {dimension_numbers = #tpu.dot_dimension_numbers<[1], [0], [0], [1], [0, 0, 1, 1], [], []>, precision = #tpu.contract_precision<fp32>} : vector<8x3xf32>, vector<3x96xf32>, vector<8x96xf32> -> vector<8x96xf32>
    %5 = vector.extract_strided_slice %1 {offsets = [0, 3], sizes = [8, 2], strides = [1, 1]} : vector<8x5xi32> to vector<8x2xi32>
    %c0_3 = arith.constant 0 : index
    %c0_4 = arith.constant 0 : index
    %6 = vector.load %arg4[%c0_3, %c0_4] : memref<16x32xf32, #tpu.memory_space<vmem>>, vector<16x32xf32>
    %7 = tpu.iota {dimensions = array<i32: 1>} : vector<8x16xi32>
    %8 = vector.extract_strided_slice %5 {offsets = [0, 0], sizes = [8, 1], strides = [1, 1]} : vector<8x2xi32> to vector<8x1xi32>
    %c0_5 = arith.constant 0 : index
    %9 = memref.load %arg1[%c0_5] : memref<2xi32, #tpu.memory_space<smem>>
    %10 = vector.broadcast %9 : i32 to vector<8x1xi32>
    %11 = arith.addi %8, %10 : vector<8x1xi32>
    %12 = vector.broadcast %11 : vector<8x1xi32> to vector<8x16xi32>
    %13 = arith.cmpi eq, %7, %12 : vector<8x16xi32>
    %14 = arith.extui %13 : vector<8x16xi1> to vector<8x16xi32>
    %15 = arith.sitofp %14 : vector<8x16xi32> to vector<8x16xf32>
    %cst_6 = arith.constant dense<0.000000e+00> : vector<8x32xf32>
    %16 = tpu.matmul %15, %6, %cst_6 {dimension_numbers = #tpu.dot_dimension_numbers<[1], [0], [0], [1], [0, 0, 1, 1], [], []>, precision = #tpu.contract_precision<fp32>} : vector<8x16xf32>, vector<16x32xf32>, vector<8x32xf32> -> vector<8x32xf32>
    %17 = vector.extract_strided_slice %5 {offsets = [0, 1], sizes = [8, 1], strides = [1, 1]} : vector<8x2xi32> to vector<8x1xi32>
    %c1 = arith.constant 1 : index
    %18 = memref.load %arg1[%c1] : memref<2xi32, #tpu.memory_space<smem>>
    %19 = vector.broadcast %18 : i32 to vector<8x1xi32>
    %20 = arith.addi %17, %19 : vector<8x1xi32>
    %21 = vector.broadcast %20 : vector<8x1xi32> to vector<8x16xi32>
    %22 = arith.cmpi eq, %7, %21 : vector<8x16xi32>
    %23 = arith.extui %22 : vector<8x16xi1> to vector<8x16xi32>
    %24 = arith.sitofp %23 : vector<8x16xi32> to vector<8x16xf32>
    %cst_7 = arith.constant dense<0.000000e+00> : vector<8x32xf32>
    %25 = tpu.matmul %24, %6, %cst_7 {dimension_numbers = #tpu.dot_dimension_numbers<[1], [0], [0], [1], [0, 0, 1, 1], [], []>, precision = #tpu.contract_precision<fp32>} : vector<8x16xf32>, vector<16x32xf32>, vector<8x32xf32> -> vector<8x32xf32>
    %cst_8 = arith.constant 0.000000e+00 : f32
    %26 = vector.broadcast %cst_8 : f32 to vector<8x32xf32>
    %27 = tpu.concatenate %4, %16, %25, %26 in 1 : vector<8x96xf32>, vector<8x32xf32>, vector<8x32xf32>, vector<8x32xf32> -> vector<8x192xf32>
    %c0_9 = arith.constant 0 : index
    %c0_10 = arith.constant 0 : index
    %28 = vector.load %arg5[%c0_9, %c0_10] : memref<1x192xf32, #tpu.memory_space<vmem>>, vector<1x192xf32>
    %29 = vector.broadcast %28 : vector<1x192xf32> to vector<8x192xf32>
    %30 = arith.addf %27, %29 : vector<8x192xf32>
    %c0_11 = arith.constant 0 : index
    %c0_12 = arith.constant 0 : index
    %31 = vector.load %arg6[%c0_11, %c0_12] : memref<8x192xf32, #tpu.memory_space<vmem>>, vector<8x192xf32>
    tpu.vector_store %arg6[%c0_11, %c0_12], %30 {strides = array<i32>} : memref<8x192xf32, #tpu.memory_space<vmem>>, vector<8x192xf32>,
    return
  }
  func.func @transform_0(%arg0: i32, %arg1: memref<2xi32, #tpu.memory_space<smem>>) -> (i32, i32) {
    %c0_i32 = arith.constant 0 : i32
    %c0_i32_0 = arith.constant 0 : i32
    return %arg0, %c0_i32 : i32, i32
  }
  func.func @transform_1(%arg0: i32, %arg1: memref<2xi32, #tpu.memory_space<smem>>) -> (i32, i32) {
    %c0_i32 = arith.constant 0 : i32
    %c0_i32_0 = arith.constant 0 : i32
    %c0_i32_1 = arith.constant 0 : i32
    return %c0_i32, %c0_i32_0 : i32, i32
  }
  func.func @transform_2(%arg0: i32, %arg1: memref<2xi32, #tpu.memory_space<smem>>) -> (i32, i32) {
    %c0_i32 = arith.constant 0 : i32
    %c0_i32_0 = arith.constant 0 : i32
    %c0_i32_1 = arith.constant 0 : i32
    return %c0_i32, %c0_i32_0 : i32, i32
  }
  func.func @transform_3(%arg0: i32, %arg1: memref<2xi32, #tpu.memory_space<smem>>) -> (i32, i32) {
    %c0_i32 = arith.constant 0 : i32
    %c0_i32_0 = arith.constant 0 : i32
    %c0_i32_1 = arith.constant 0 : i32
    return %c0_i32, %c0_i32_0 : i32, i32
  }
  func.func @transform_4(%arg0: i32, %arg1: memref<2xi32, #tpu.memory_space<smem>>) -> (i32, i32) {
    %c0_i32 = arith.constant 0 : i32
    %c0_i32_0 = arith.constant 0 : i32
    return %arg0, %c0_i32 : i32, i32
  }
}

</mosaic_0001>

<bundles_post_ra>
// kernel: tpu_custom_call.1
= control target key start
LH: loop header
LB: loop body
LE: loop exit
PB: predicated region body
PF: predicated region fallthrough
CT: control target
= control target key end

     0   :  { %s748_s21 = smov [#allocation3]   ;;  %s830_s0 = inlined_call_operand.hbm [shape: s32[2], index: 0, kind: input, shape index: {}]   ;;  %s831_s1 = inlined_call_operand.hbm [shape: f32[8,5], index: 1, kind: input, shape index: {}]   ;;  %s832_s2 = inlined_call_operand.hbm [shape: f32[3,96], index: 2, kind: input, shape index: {}]   ;;  %s833_s3 = inlined_call_operand.hbm [shape: f32[16,32], index: 3, kind: input, shape index: {}]   ;;  %s834_s4 = inlined_call_operand.vmem [shape: f32[1,192], index: 4, kind: input, shape index: {}]   ;;  %s835_s5 = inlined_call_operand.hbm [shape: f32[8,192], index: 5, kind: output, shape index: {}]  }
   0x1   :  { %s11_s20 = sshll.u32 %s830_s0, 4  ;;  %s12_s20 = int_to_ptr.hbm [resolvable:$true] %s11_s20 }
   0x2   :  { %14 = dma.hbm_to_smem %s12_s20, 16, %s748_s21, [#allocation2] }
   0x3   :  { %740 = dma.done.wait [#allocation2], 16 }
   0x4   :  { %741 = vsyncadd [#allocation2], 4294967280 }
   0x5   :  { %17 = sfence }
   0x6   :  { %18 = vsyncpa [#allocation5], 0 }
   0x7   :  { %19 = vsyncpa [#allocation8], 0  ;;  %s37_s24 = sshll.u32 %s832_s2, 4  ;;  %s38_s24 = int_to_ptr.hbm [resolvable:$true] %s37_s24 }
   0x8   :  { %20 = vsyncpa [#allocation6], 0  ;;  %s749_s25 = smov [#allocation7]   ;;  %s26_s0 = sshll.u32 %s831_s1, 4  ;;  %s27_s0 = int_to_ptr.hbm [resolvable:$true] %s26_s0 }
   0x9   :  { %s39_s26 = sshll.u32 %s749_s25, 4  ;;  %s750_s29 = smov [#allocation4]   ;;  %s40_s26 = int_to_ptr.vmem [resolvable:$true] %s39_s26 }
   0xa   :  { %42 = dma.hbm_to_vmem [thread:$0]  %s38_s24, 64, %s40_s26, [#allocation8]  }
   0xb   :  { %s28_s30 = sshll.u32 %s750_s29, 4  ;;  %s47_s8 = sshll.u32 %s833_s3, 4  ;;  %s29_s30 = int_to_ptr.vmem [resolvable:$true] %s28_s30  ;;  %s48_s8 = int_to_ptr.hbm [resolvable:$true] %s47_s8 }
   0xc   :  { %31 = dma.hbm_to_vmem [thread:$0]  %s27_s0, 128, %s29_s30, [#allocation5]  }
   0xd   :  { %s751_s2 = smov [#allocation9]   ;;  %s752_s10 = smov 128  }
   0xe   :  { %s49_s9 = sshll.u32 %s751_s2, 4  ;;  %s753_s11 = smov 8   ;;  %s50_s9 = int_to_ptr.vmem [resolvable:$true] %s49_s9 }
   0xf   :  { %55 = dma.hbm_to_vmem [thread:$0]  %s48_s8, 256, %s50_s9, [#allocation8], %s752_s10, %s752_s10, %s753_s11  }
  0x10   :  { %742 = dma.done.wait [#allocation5], 128  }
  0x11   :  { %743 = vsyncadd [#allocation5], 4294967168 }
  0x12   :  { %744 = dma.done.wait [#allocation8], 320  }
  0x13   :  { %745 = vsyncadd [#allocation8], 4294966976  ;;  %v754_v0 = vmov 3   ;;  %s230_s1 = sld [smem:[#allocation3]]  ;;  %vm73_vm0 = vcmask 23552   ;;  %vm76_vm1 = vcmask 1042432   ;;  %v228_v32 = vlaneseq }
  0x14   :  { %630 = vset.pattern.permute.xlu0 %v754_v0  ;;  %s614_s12 = sld [smem:[#allocation3 + $0x1]]  ;;  %v70_v1 = vld [vmem:[#allocation4] sm:$0xff]  ;;  %v72_v3 = vld [vmem:[#allocation7] sm:$0x7]  ;;  %v227_v4 = vld [vmem:[#allocation9 + $0x8] sm:$0xff]  ;;  %v755_v25 = vmov 4  }
  0x15   :  { %v74_v6 = vsel %vm73_vm0, %v70_v1, 0  ;;  %v78_v7 = vsel %vm76_vm1, %v72_v3, 0  ;;  %v801_v10 = vand.u32 4294901760, %v227_v4  ;;  %v226_v26 = vld [vmem:[#allocation9] sm:$0xff]  ;;  %v229_v33 = vand.u32 127, %v228_v32  ;;  %s757_s3 = smov 96  }
  0x16   :  { %v97_v8 = vand.u32 4294901760, %v74_v6  ;;  %v95_v9 = vand.u32 4294901760, %v78_v7  ;;  %v259_v27 = vand.u32 4294901760, %v226_v26  ;;  %vm239_vm2 = vcmask 130048   ;;  %s758_s15 = smov [#allocation10]   ;;  %s599_s19 = sshll.u32 %s835_s5, 4  ;;  %s600_s19 = int_to_ptr.hbm [resolvable:$true] %s599_s19 }
  0x17   :  { %v804_v14 = vsub.f32 %v227_v4, %v801_v10  ;;  %v756_v35 = vmov 0.0   ;;  %vm579_vm5 = vcmask 261120   ;;  %vm590_vm6 = vcmask 523264   ;;  %s597_s16 = sshll.u32 %s758_s15, 4  ;;  %s598_s16 = int_to_ptr.vmem [resolvable:$true] %s597_s16 }
  0x18   :  { %96 = vmatpush.msra.mxu0 %v95_v9  ;;  %v98_v12 = vsub.f32 %v74_v6, %v97_v8  ;;  %v122_v13 = vsub.f32 %v78_v7, %v95_v9  ;;  %172 = vmatpush.msra.mxu3 %v95_v9  ;;  %v291_v28 = vsub.f32 %v226_v26, %v259_v27  ;;  %vm577_vm7 = vcmask 785408  }
  0x19   :  { %v231_v2 = vstv %s230_s1  ;;  %v286_v17 = vand.u32 4294901760, %v804_v14 }
  0x1a   :  { %v232_v5 = vadd.s32 %v231_v2, %v70_v1  ;;  %v403_v11 = vstv %s614_s12  ;;  %v99_v15 = vand.u32 4294901760, %v98_v12  ;;  %v123_v16 = vand.u32 4294901760, %v122_v13  ;;  %149 = vmatpush.msra.mxu2 %v122_v13 }
  0x1b   :  { %v404_v18 = vadd.s32 %v403_v11, %v70_v1  ;;  %152 = vmatmul.f32.vlgmr.msra.gmra.mxu2 %v98_v12  ;;  %v287_v21 = vsub.f32 %v804_v14, %v286_v17  ;;  %v292_v29 = vand.u32 4294901760, %v291_v28 }
  0x1c   :  { %234 = vperm.xlu0 %630, %v232_v5   ;;  %v100_v19 = vsub.f32 %v98_v12, %v99_v15  ;;  %v124_v20 = vsub.f32 %v122_v13, %v123_v16  ;;  %176 = vmatmul.f32.vlgmr.msra.gmra.mxu3 %v99_v15 }
  0x1d   :  { %198 = vmatpush.msrb.mxu0 %v123_v16  ;;  %258 = vmatpush.msrb.mxu2 %v801_v10  ;;  %v288_v24 = vand.u32 4294901760, %v287_v21  ;;  %v293_v30 = vsub.f32 %v291_v28, %v292_v29 }
  0x1e   :  { %v101_v22 = vand.u32 4294901760, %v100_v19  ;;  %v125_v23 = vand.u32 4294901760, %v124_v20 }
  0x1f   :  { %289 = vmatpush.msrb.mxu3 %v288_v24  ;;  %260 = vmatpush.msrb.mxu2 %v259_v27  ;;  %v294_v31 = vand.u32 4294901760, %v293_v30 }
  0x20   :  { %102 = vmatmul.f32.vlgmr.msra.gmra.mxu0 %v101_v22  ;;  %126 = vmatpush.msra.mxu1 %v125_v23 }
  0x21   :  { %128 = vmatmul.f32.vlgmr.msra.gmra.mxu1 %v97_v8  ;;  %317 = vmatpush.msra.mxu0 %v804_v14 }
  0x22   :  { %220 = vmatpush.msrb.mxu1 %v95_v9  ;;  %369 = vmatpush.msra.mxu2 %v286_v17 }
  0x23   :  { %320 = vmatpush.msra.mxu0 %v291_v28  ;;  %295 = vmatpush.msrb.mxu3 %v294_v31 }
  0x24   :  { %631 = vset.pattern.permute.xlu0 %v755_v25  ;;  %342 = vmatpush.msra.mxu1 %v801_v10 }
  0x25   :  { %406 = vperm.xlu0 %631, %v404_v18   ;;  %373 = vmatpush.msra.mxu2 %v292_v29  ;;  %v581_v18 = vld [vmem:[%s834_s4] sm:$0x3] }
  0x26   :  { %344 = vmatpush.msra.mxu1 %v259_v27  ;;  %394 = vmatpush.msra.mxu3 %v801_v10  ;;  %v584_v19 = vperm.slane %v581_v18, 1  ;;  %v583_v22 = vperm.slane %v581_v18, 0 }
  0x28   :  { %200 = vmatmul.f32.vlgmr.msrb.gmra.mxu0 %v97_v8  ;;  %396 = vmatpush.msra.mxu3 %v259_v27 }
  0x29   :  { %222 = vmatmul.f32.vlgmr.msrb.gmra.mxu1 %v97_v8  ;;  %429 = vmatpush.msrb.mxu0 %v801_v10 }
  0x2a   :  { %460 = vmatpush.msrb.mxu1 %v288_v24 }
  0x2b   :  { %431 = vmatpush.msrb.mxu0 %v259_v27 }
  0x2c   :  { %466 = vmatpush.msrb.mxu1 %v294_v31 }
  0x8e   :  { %v235_v34 = vpop.permute.xlu0 %234 }
  0x8f   :  { %vm236_vm3 = vcmp.eq.s32.totalorder %v229_v33, %v235_v34 }
  0x90   :  { %v610_v36 = vsel %vm236_vm3, 1.0, %v756_v35 }
  0x91   :  { %v241_v37 = vsel %vm239_vm2, %v610_v36, 0  ;;  %611 = vmatmul.msk.f32.vlgmr.msrb.gmra.mxu3 %vm239_vm2, %v610_v36 }
  0x92   :  { %v262_v38 = vsub.f32 %v241_v37, %v241_v37  ;;  %513 = vmatpush.msrb.mxu3 %v801_v10 }
  0x94   :  { %323 = vmatmul.f32.vlgmr.msra.gmra.mxu0 %v262_v38  ;;  %v263_v39 = vand.u32 4294901760, %v262_v38  ;;  %515 = vmatpush.msrb.mxu3 %v259_v27 }
  0x95   :  { %540 = vmatpush.msra.mxu0 %v286_v17 }
  0x96   :  { %348 = vmatmul.f32.vlgmr.msra.gmra.mxu1 %v263_v39  ;;  %v264_v40 = vsub.f32 %v262_v38, %v263_v39 }
  0x97   :  { %v407_v41 = vpop.permute.xlu0 %406  ;;  %544 = vmatpush.msra.mxu0 %v292_v29  ;;  %565 = vmatpush.msra.mxu1 %v801_v10 }
  0x98   :  { %v265_v42 = vand.u32 4294901760, %v264_v40  ;;  %vm408_vm4 = vcmp.eq.s32.totalorder %v229_v33, %v407_v41 }
  0x99   :  { %613 = vmatmul.msk.f32.vlgmr.msra.gmra.mxu3 %vm239_vm2, %v610_v36  ;;  %v615_v43 = vsel %vm408_vm4, 1.0, %v756_v35  ;;  %567 = vmatpush.msra.mxu1 %v259_v27 }
  0x9a   :  { %266 = vmatmul.f32.vlgmr.msrb.gmra.mxu2 %v265_v42  ;;  %v412_v44 = vsel %vm239_vm2, %v615_v43, 0 }
  0x9b   :  { %v433_v45 = vsub.f32 %v412_v44, %v412_v44  ;;  %488 = vmatpush.msrb.mxu2 %v804_v14 }
  0x9d   :  { %491 = vmatpush.msrb.mxu2 %v291_v28  ;;  %v434_v46 = vand.u32 4294901760, %v433_v45  ;;  %v103_v49 = vpop.f32.mrf.mxu0 }
  0x9e   :  { %616 = vmatmul.msk.f32.vlgmr.msrb.gmra.mxu1 %vm239_vm2, %v615_v43  ;;  %v129_v50 = vpop.f32.mrf.mxu1  ;;  %v153_v52 = vpop.f32.mrf.mxu2 }
  0x9f   :  { %v435_v47 = vsub.f32 %v433_v45, %v434_v46  ;;  %v130_v51 = vadd.f32 %v129_v50, %v103_v49  ;;  %v177_v54 = vpop.f32.mrf.mxu3 }
  0xa1   :  { %v436_v48 = vand.u32 4294901760, %v435_v47  ;;  %519 = vmatmul.f32.vlgmr.msrb.gmra.mxu3 %v434_v46  ;;  %v154_v53 = vadd.f32 %v153_v52, %v130_v51 }
  0xa2   :  { %612 = vmatmul.msk.f32.vlgmr.msra.gmra.mxu2 %vm239_vm2, %v610_v36 }
  0xa3   :  { %437 = vmatmul.f32.vlgmr.msrb.gmra.mxu0 %v436_v48  ;;  %v178_v55 = vadd.f32 %v177_v54, %v154_v53 }
  0xa5   :  { %v201_v56 = vpop.f32.mrf.mxu0 }
  0xa6   :  { %618 = vmatmul.msk.f32.vlgmr.msra.gmra.mxu1 %vm239_vm2, %v615_v43  ;;  %v202_v57 = vadd.f32 %v201_v56, %v178_v55  ;;  %v223_v58 = vpop.f32.mrf.mxu1 }
  0xa8   :  { %v224_v59 = vadd.f32 %v223_v58, %v202_v57 }
  0xaa   :  { %494 = vmatmul.f32.vlgmr.msrb.gmra.mxu2 %v433_v45 }
  0xab   :  { %617 = vmatmul.msk.f32.vlgmr.msra.gmra.mxu0 %vm239_vm2, %v615_v43 }
 0x111   :  { %v324_v63 = vpop.f32.mrf.mxu0 }
 0x113   :  { %v349_v1 = vpop.f32.mrf.mxu1 }
 0x114   :  { %v298_v60 = vpop.f32.mrf.mxu3 }
 0x11b   :  { %v469_v7 = vpop.f32.mrf.mxu1 }
 0x11c   :  { %v399_v5 = vpop.f32.mrf.mxu3 }
 0x11d   :  { %v267_v61 = vpop.f32.mrf.mxu2 }
 0x11e   :  { %v299_v62 = vadd.f32 %v298_v60, %v267_v61 }
 0x120   :  { %v325_v0 = vadd.f32 %v324_v63, %v299_v62  ;;  %v438_v8 = vpop.f32.mrf.mxu0 }
 0x121   :  { %v470_v9 = vadd.f32 %v469_v7, %v438_v8 }
 0x122   :  { %v350_v2 = vadd.f32 %v349_v1, %v325_v0 }
 0x123   :  { %v570_v16 = vpop.f32.mrf.mxu1 }
 0x124   :  { %v520_v12 = vpop.f32.mrf.mxu3 }
 0x125   :  { %v376_v3 = vpop.f32.mrf.mxu2 }
 0x126   :  { %v377_v4 = vadd.f32 %v376_v3, %v350_v2 }
 0x128   :  { %v400_v6 = vadd.f32 %v399_v5, %v377_v4  ;;  %v547_v14 = vpop.f32.mrf.mxu0 }
 0x12a   :  { %574 = vrot.lane.b32.xlu1 %v400_v6, %s757_s3 }
 0x12d   :  { %v495_v10 = vpop.f32.mrf.mxu2 }
 0x12e   :  { %v496_v11 = vadd.f32 %v495_v10, %v470_v9 }
 0x130   :  { %v521_v13 = vadd.f32 %v520_v12, %v496_v11 }
 0x132   :  { %v548_v15 = vadd.f32 %v547_v14, %v521_v13 }
 0x134   :  { %v571_v17 = vadd.f32 %v570_v16, %v548_v15 }
 0x136   :  { %v580_v20 = vsel %vm579_vm5, %v571_v17, 0.0 }
 0x137   :  { %v588_v21 = vadd.f32 %v584_v19, %v580_v20 }
 0x139   :  { %591 = vst.msk [vmem:[#allocation10 + $0x8] sm:$0xff] %vm590_vm6, %v588_v21 }
 0x19c   :  { %v575_v23 = vpop.permute.xlu1 %574 }
 0x19d   :  { %v578_v24 = vsel %vm577_vm7, %v224_v59, %v575_v23 }
 0x19e   :  { %v587_v25 = vadd.f32 %v583_v22, %v578_v24 }
 0x1a0   :  { %589 = vst [vmem:[#allocation10] sm:$0xff] %v587_v25 }
 0x1a1   :  { %602 = dma.vmem_to_hbm [thread:$0]  %s598_s16, 256, %s600_s19, [#allocation6]  }
 0x1a2   :  { %746 = dma.done.wait [#allocation6], 256  }
 0x1a3   :  { %747 = vsyncadd [#allocation6], 4294967040 }
 0x1a4   :  { %607 = vsyncpa [#allocation5], 1 }
 0x1a5   :  { %608 = vsyncpa [#allocation8], 1 }
 0x1a6   :  { %609 = vsyncpa [#allocation6], 1 }

// kernel: tpu_custom_call.1
= control target key start
LH: loop header
LB: loop body
LE: loop exit
PB: predicated region body
PF: predicated region fallthrough
CT: control target
= control target key end

     0   :  { %s748_s21 = smov [#allocation3]   ;;  %s830_s0 = inlined_call_operand.hbm [shape: s32[2], index: 0, kind: input, shape index: {}]   ;;  %s831_s1 = inlined_call_operand.hbm [shape: f32[8,5], index: 1, kind: input, shape index: {}]   ;;  %s832_s2 = inlined_call_operand.hbm [shape: f32[3,96], index: 2, kind: input, shape index: {}]   ;;  %s833_s3 = inlined_call_operand.hbm [shape: f32[16,32], index: 3, kind: input, shape index: {}]   ;;  %s834_s4 = inlined_call_operand.vmem [shape: f32[1,192], index: 4, kind: input, shape index: {}]   ;;  %s835_s5 = inlined_call_operand.hbm [shape: f32[8,192], index: 5, kind: output, shape index: {}]  }
   0x1   :  { %s11_s20 = sshll.u32 %s830_s0, 4  ;;  %s12_s20 = int_to_ptr.hbm [resolvable:$true] %s11_s20 }
   0x2   :  { %14 = dma.hbm_to_smem %s12_s20, 16, %s748_s21, [#allocation2] }
   0x3   :  { %740 = dma.done.wait [#allocation2], 16 }
   0x4   :  { %741 = vsyncadd [#allocation2], 4294967280 }
   0x5   :  { %17 = sfence }
   0x6   :  { %18 = vsyncpa [#allocation5], 0 }
   0x7   :  { %19 = vsyncpa [#allocation8], 0  ;;  %s37_s24 = sshll.u32 %s832_s2, 4  ;;  %s38_s24 = int_to_ptr.hbm [resolvable:$true] %s37_s24 }
   0x8   :  { %20 = vsyncpa [#allocation6], 0  ;;  %s749_s25 = smov [#allocation7]   ;;  %s26_s0 = sshll.u32 %s831_s1, 4  ;;  %s27_s0 = int_to_ptr.hbm [resolvable:$true] %s26_s0 }
   0x9   :  { %s39_s26 = sshll.u32 %s749_s25, 4  ;;  %s750_s29 = smov [#allocation4]   ;;  %s40_s26 = int_to_ptr.vmem [resolvable:$true] %s39_s26 }
   0xa   :  { %42 = dma.hbm_to_vmem [thread:$0]  %s38_s24, 64, %s40_s26, [#allocation8]  }
   0xb   :  { %s28_s30 = sshll.u32 %s750_s29, 4  ;;  %s47_s8 = sshll.u32 %s833_s3, 4  ;;  %s29_s30 = int_to_ptr.vmem [resolvable:$true] %s28_s30  ;;  %s48_s8 = int_to_ptr.hbm [resolvable:$true] %s47_s8 }
   0xc   :  { %31 = dma.hbm_to_vmem [thread:$0]  %s27_s0, 128, %s29_s30, [#allocation5]  }
   0xd   :  { %s751_s2 = smov [#allocation9]   ;;  %s752_s10 = smov 128  }
   0xe   :  { %s49_s9 = sshll.u32 %s751_s2, 4  ;;  %s753_s11 = smov 8   ;;  %s50_s9 = int_to_ptr.vmem [resolvable:$true] %s49_s9 }
   0xf   :  { %55 = dma.hbm_to_vmem [thread:$0]  %s48_s8, 256, %s50_s9, [#allocation8], %s752_s10, %s752_s10, %s753_s11  }
  0x10   :  { %742 = dma.done.wait [#allocation5], 128  }
  0x11   :  { %743 = vsyncadd [#allocation5], 4294967168 }
  0x12   :  { %744 = dma.done.wait [#allocation8], 320  }
  0x13   :  { %745 = vsyncadd [#allocation8], 4294966976  ;;  %v754_v0 = vmov 3   ;;  %s230_s1 = sld [smem:[#allocation3]]  ;;  %vm73_vm0 = vcmask 23552   ;;  %vm76_vm1 = vcmask 1042432   ;;  %v228_v32 = vlaneseq }
  0x14   :  { %630 = vset.pattern.permute.xlu0 %v754_v0  ;;  %s614_s12 = sld [smem:[#allocation3 + $0x1]]  ;;  %v70_v1 = vld [vmem:[#allocation4] sm:$0xff]  ;;  %v72_v3 = vld [vmem:[#allocation7] sm:$0x7]  ;;  %v227_v4 = vld [vmem:[#allocation9 + $0x8] sm:$0xff]  ;;  %v755_v25 = vmov 4  }
  0x15   :  { %v74_v6 = vsel %vm73_vm0, %v70_v1, 0  ;;  %v78_v7 = vsel %vm76_vm1, %v72_v3, 0  ;;  %v801_v10 = vand.u32 4294901760, %v227_v4  ;;  %v226_v26 = vld [vmem:[#allocation9] sm:$0xff]  ;;  %v229_v33 = vand.u32 127, %v228_v32  ;;  %s757_s3 = smov 96  }
  0x16   :  { %v97_v8 = vand.u32 4294901760, %v74_v6  ;;  %v95_v9 = vand.u32 4294901760, %v78_v7  ;;  %v259_v27 = vand.u32 4294901760, %v226_v26  ;;  %vm239_vm2 = vcmask 130048   ;;  %s758_s15 = smov [#allocation10]   ;;  %s599_s19 = sshll.u32 %s835_s5, 4  ;;  %s600_s19 = int_to_ptr.hbm [resolvable:$true] %s599_s19 }
  0x17   :  { %v804_v14 = vsub.f32 %v227_v4, %v801_v10  ;;  %v756_v35 = vmov 0.0   ;;  %vm579_vm5 = vcmask 261120   ;;  %vm590_vm6 = vcmask 523264   ;;  %s597_s16 = sshll.u32 %s758_s15, 4  ;;  %s598_s16 = int_to_ptr.vmem [resolvable:$true] %s597_s16 }
  0x18   :  { %96 = vmatpush.msra.mxu0 %v95_v9  ;;  %v98_v12 = vsub.f32 %v74_v6, %v97_v8  ;;  %v122_v13 = vsub.f32 %v78_v7, %v95_v9  ;;  %172 = vmatpush.msra.mxu3 %v95_v9  ;;  %v291_v28 = vsub.f32 %v226_v26, %v259_v27  ;;  %vm577_vm7 = vcmask 785408  }
  0x19   :  { %v231_v2 = vstv %s230_s1  ;;  %v286_v17 = vand.u32 4294901760, %v804_v14 }
  0x1a   :  { %v232_v5 = vadd.s32 %v231_v2, %v70_v1  ;;  %v403_v11 = vstv %s614_s12  ;;  %v99_v15 = vand.u32 4294901760, %v98_v12  ;;  %v123_v16 = vand.u32 4294901760, %v122_v13  ;;  %149 = vmatpush.msra.mxu2 %v122_v13 }
  0x1b   :  { %v404_v18 = vadd.s32 %v403_v11, %v70_v1  ;;  %152 = vmatmul.f32.vlgmr.msra.gmra.mxu2 %v98_v12  ;;  %v287_v21 = vsub.f32 %v804_v14, %v286_v17  ;;  %v292_v29 = vand.u32 4294901760, %v291_v28 }
  0x1c   :  { %234 = vperm.xlu0 %630, %v232_v5   ;;  %v100_v19 = vsub.f32 %v98_v12, %v99_v15  ;;  %v124_v20 = vsub.f32 %v122_v13, %v123_v16  ;;  %176 = vmatmul.f32.vlgmr.msra.gmra.mxu3 %v99_v15 }
  0x1d   :  { %198 = vmatpush.msrb.mxu0 %v123_v16  ;;  %258 = vmatpush.msrb.mxu2 %v801_v10  ;;  %v288_v24 = vand.u32 4294901760, %v287_v21  ;;  %v293_v30 = vsub.f32 %v291_v28, %v292_v29 }
  0x1e   :  { %v101_v22 = vand.u32 4294901760, %v100_v19  ;;  %v125_v23 = vand.u32 4294901760, %v124_v20 }
  0x1f   :  { %289 = vmatpush.msrb.mxu3 %v288_v24  ;;  %260 = vmatpush.msrb.mxu2 %v259_v27  ;;  %v294_v31 = vand.u32 4294901760, %v293_v30 }
  0x20   :  { %102 = vmatmul.f32.vlgmr.msra.gmra.mxu0 %v101_v22  ;;  %126 = vmatpush.msra.mxu1 %v125_v23 }
  0x21   :  { %128 = vmatmul.f32.vlgmr.msra.gmra.mxu1 %v97_v8  ;;  %317 = vmatpush.msra.mxu0 %v804_v14 }
  0x22   :  { %220 = vmatpush.msrb.mxu1 %v95_v9  ;;  %369 = vmatpush.msra.mxu2 %v286_v17 }
  0x23   :  { %320 = vmatpush.msra.mxu0 %v291_v28  ;;  %295 = vmatpush.msrb.mxu3 %v294_v31 }
  0x24   :  { %631 = vset.pattern.permute.xlu0 %v755_v25  ;;  %342 = vmatpush.msra.mxu1 %v801_v10 }
  0x25   :  { %406 = vperm.xlu0 %631, %v404_v18   ;;  %373 = vmatpush.msra.mxu2 %v292_v29  ;;  %v581_v18 = vld [vmem:[%s834_s4] sm:$0x3] }
  0x26   :  { %344 = vmatpush.msra.mxu1 %v259_v27  ;;  %394 = vmatpush.msra.mxu3 %v801_v10  ;;  %v584_v19 = vperm.slane %v581_v18, 1  ;;  %v583_v22 = vperm.slane %v581_v18, 0 }
  0x28   :  { %200 = vmatmul.f32.vlgmr.msrb.gmra.mxu0 %v97_v8  ;;  %396 = vmatpush.msra.mxu3 %v259_v27 }
  0x29   :  { %222 = vmatmul.f32.vlgmr.msrb.gmra.mxu1 %v97_v8  ;;  %429 = vmatpush.msrb.mxu0 %v801_v10 }
  0x2a   :  { %460 = vmatpush.msrb.mxu1 %v288_v24 }
  0x2b   :  { %431 = vmatpush.msrb.mxu0 %v259_v27 }
  0x2c   :  { %466 = vmatpush.msrb.mxu1 %v294_v31 }
  0x8e   :  { %v235_v34 = vpop.permute.xlu0 %234 }
  0x8f   :  { %vm236_vm3 = vcmp.eq.s32.totalorder %v229_v33, %v235_v34 }
  0x90   :  { %v610_v36 = vsel %vm236_vm3, 1.0, %v756_v35 }
  0x91   :  { %v241_v37 = vsel %vm239_vm2, %v610_v36, 0  ;;  %611 = vmatmul.msk.f32.vlgmr.msrb.gmra.mxu3 %vm239_vm2, %v610_v36 }
  0x92   :  { %v262_v38 = vsub.f32 %v241_v37, %v241_v37  ;;  %513 = vmatpush.msrb.mxu3 %v801_v10 }
  0x94   :  { %323 = vmatmul.f32.vlgmr.msra.gmra.mxu0 %v262_v38  ;;  %v263_v39 = vand.u32 4294901760, %v262_v38  ;;  %515 = vmatpush.msrb.mxu3 %v259_v27 }
  0x95   :  { %540 = vmatpush.msra.mxu0 %v286_v17 }
  0x96   :  { %348 = vmatmul.f32.vlgmr.msra.gmra.mxu1 %v263_v39  ;;  %v264_v40 = vsub.f32 %v262_v38, %v263_v39 }
  0x97   :  { %v407_v41 = vpop.permute.xlu0 %406  ;;  %544 = vmatpush.msra.mxu0 %v292_v29  ;;  %565 = vmatpush.msra.mxu1 %v801_v10 }
  0x98   :  { %v265_v42 = vand.u32 4294901760, %v264_v40  ;;  %vm408_vm4 = vcmp.eq.s32.totalorder %v229_v33, %v407_v41 }
  0x99   :  { %613 = vmatmul.msk.f32.vlgmr.msra.gmra.mxu3 %vm239_vm2, %v610_v36  ;;  %v615_v43 = vsel %vm408_vm4, 1.0, %v756_v35  ;;  %567 = vmatpush.msra.mxu1 %v259_v27 }
  0x9a   :  { %266 = vmatmul.f32.vlgmr.msrb.gmra.mxu2 %v265_v42  ;;  %v412_v44 = vsel %vm239_vm2, %v615_v43, 0 }
  0x9b   :  { %v433_v45 = vsub.f32 %v412_v44, %v412_v44  ;;  %488 = vmatpush.msrb.mxu2 %v804_v14 }
  0x9d   :  { %491 = vmatpush.msrb.mxu2 %v291_v28  ;;  %v434_v46 = vand.u32 4294901760, %v433_v45  ;;  %v103_v49 = vpop.f32.mrf.mxu0 }
  0x9e   :  { %616 = vmatmul.msk.f32.vlgmr.msrb.gmra.mxu1 %vm239_vm2, %v615_v43  ;;  %v129_v50 = vpop.f32.mrf.mxu1  ;;  %v153_v52 = vpop.f32.mrf.mxu2 }
  0x9f   :  { %v435_v47 = vsub.f32 %v433_v45, %v434_v46  ;;  %v130_v51 = vadd.f32 %v129_v50, %v103_v49  ;;  %v177_v54 = vpop.f32.mrf.mxu3 }
  0xa1   :  { %v436_v48 = vand.u32 4294901760, %v435_v47  ;;  %519 = vmatmul.f32.vlgmr.msrb.gmra.mxu3 %v434_v46  ;;  %v154_v53 = vadd.f32 %v153_v52, %v130_v51 }
  0xa2   :  { %612 = vmatmul.msk.f32.vlgmr.msra.gmra.mxu2 %vm239_vm2, %v610_v36 }
  0xa3   :  { %437 = vmatmul.f32.vlgmr.msrb.gmra.mxu0 %v436_v48  ;;  %v178_v55 = vadd.f32 %v177_v54, %v154_v53 }
  0xa5   :  { %v201_v56 = vpop.f32.mrf.mxu0 }
  0xa6   :  { %618 = vmatmul.msk.f32.vlgmr.msra.gmra.mxu1 %vm239_vm2, %v615_v43  ;;  %v202_v57 = vadd.f32 %v201_v56, %v178_v55  ;;  %v223_v58 = vpop.f32.mrf.mxu1 }
  0xa8   :  { %v224_v59 = vadd.f32 %v223_v58, %v202_v57 }
  0xaa   :  { %494 = vmatmul.f32.vlgmr.msrb.gmra.mxu2 %v433_v45 }
  0xab   :  { %617 = vmatmul.msk.f32.vlgmr.msra.gmra.mxu0 %vm239_vm2, %v615_v43 }
 0x111   :  { %v324_v63 = vpop.f32.mrf.mxu0 }
 0x113   :  { %v349_v1 = vpop.f32.mrf.mxu1 }
 0x114   :  { %v298_v60 = vpop.f32.mrf.mxu3 }
 0x11b   :  { %v469_v7 = vpop.f32.mrf.mxu1 }
 0x11c   :  { %v399_v5 = vpop.f32.mrf.mxu3 }
 0x11d   :  { %v267_v61 = vpop.f32.mrf.mxu2 }
 0x11e   :  { %v299_v62 = vadd.f32 %v298_v60, %v267_v61 }
 0x120   :  { %v325_v0 = vadd.f32 %v324_v63, %v299_v62  ;;  %v438_v8 = vpop.f32.mrf.mxu0 }
 0x121   :  { %v470_v9 = vadd.f32 %v469_v7, %v438_v8 }
 0x122   :  { %v350_v2 = vadd.f32 %v349_v1, %v325_v0 }
 0x123   :  { %v570_v16 = vpop.f32.mrf.mxu1 }
 0x124   :  { %v520_v12 = vpop.f32.mrf.mxu3 }
 0x125   :  { %v376_v3 = vpop.f32.mrf.mxu2 }
 0x126   :  { %v377_v4 = vadd.f32 %v376_v3, %v350_v2 }
 0x128   :  { %v400_v6 = vadd.f32 %v399_v5, %v377_v4  ;;  %v547_v14 = vpop.f32.mrf.mxu0 }
 0x12a   :  { %574 = vrot.lane.b32.xlu1 %v400_v6, %s757_s3 }
 0x12d   :  { %v495_v10 = vpop.f32.mrf.mxu2 }
 0x12e   :  { %v496_v11 = vadd.f32 %v495_v10, %v470_v9 }
 0x130   :  { %v521_v13 = vadd.f32 %v520_v12, %v496_v11 }
 0x132   :  { %v548_v15 = vadd.f32 %v547_v14, %v521_v13 }
 0x134   :  { %v571_v17 = vadd.f32 %v570_v16, %v548_v15 }
 0x136   :  { %v580_v20 = vsel %vm579_vm5, %v571_v17, 0.0 }
 0x137   :  { %v588_v21 = vadd.f32 %v584_v19, %v580_v20 }
 0x139   :  { %591 = vst.msk [vmem:[#allocation10 + $0x8] sm:$0xff] %vm590_vm6, %v588_v21 }
 0x19c   :  { %v575_v23 = vpop.permute.xlu1 %574 }
 0x19d   :  { %v578_v24 = vsel %vm577_vm7, %v224_v59, %v575_v23 }
 0x19e   :  { %v587_v25 = vadd.f32 %v583_v22, %v578_v24 }
 0x1a0   :  { %589 = vst [vmem:[#allocation10] sm:$0xff] %v587_v25 }
 0x1a1   :  { %602 = dma.vmem_to_hbm [thread:$0]  %s598_s16, 256, %s600_s19, [#allocation6]  }
 0x1a2   :  { %746 = dma.done.wait [#allocation6], 256  }
 0x1a3   :  { %747 = vsyncadd [#allocation6], 4294967040 }
 0x1a4   :  { %607 = vsyncpa [#allocation5], 1 }
 0x1a5   :  { %608 = vsyncpa [#allocation8], 1 }
 0x1a6   :  { %609 = vsyncpa [#allocation6], 1 }

</bundles_post_ra>
